<compile_context>
chip_gen: v7x
topology: tpu7x:2x2x1
jax: 0.10.0
libtpu: 0.0.40
codegen_flags: <defaults>
</compile_context>

<pallas_src>
import functools

import jax
import jax.numpy as jnp
from jax import lax
from jax.experimental import pallas as pl
from jax.experimental.pallas import tpu as pltpu

EPS = 1e-5


# --------------------------------------------------------------------------- #
# Kernels.  Blocks are (TB, T, N): native module layout, no wrapper transposes.
# --------------------------------------------------------------------------- #
def _norm_kernel(x_ref, w_ref, b_ref, y_ref, stats_ref):
    x = x_ref[...].astype(jnp.float32)                        # (TB, T, N)
    inv_t = 1.0 / x.shape[1]
    mean = jnp.sum(x, axis=1, keepdims=True) * inv_t          # (TB, 1, N), XLU
    # Single-pass variance (avoids the full-block (x - mean) temporary);
    # clamp >= 0 against cancellation when |mean| >> std.
    mean_sq = jnp.sum(x * x, axis=1, keepdims=True) * inv_t
    var = jnp.maximum(mean_sq - mean * mean, 0.0)
    std = jnp.sqrt(var + EPS)                                 # torch stdev (unbiased=False)
    inv_std = lax.rsqrt(var + EPS)                            # per-feature, EUP

    # Fold normalize + affine:  ((x - mean)/std)*w + b  ==  x*scale + shift
    w = w_ref[...]                                            # (1, 1, N)
    b = b_ref[...]
    scale = w * inv_std                                       # (TB, 1, N)
    shift = b - mean * scale
    y_ref[...] = (x * scale + shift).astype(y_ref.dtype)      # 1 mul + 1 add / elem

    # Packed stats: [:, 0, :] = mean, [:, 1, :] = std; one unmasked store.
    stats_ref[...] = jnp.concatenate([mean, std], axis=1).astype(stats_ref.dtype)


def _denorm_kernel(x_ref, stats_ref, w_ref, b_ref, y_ref):
    x = x_ref[...].astype(jnp.float32)                        # (TB, T, N)
    stats = stats_ref[...].astype(jnp.float32)                # (TB, 2, N)
    mean = stats[:, 0:1, :]
    std = stats[:, 1:2, :]
    w = w_ref[...]                                            # (1, 1, N)
    b = b_ref[...]
    # ((x - b)/(w + eps^2))*std + mean  ==  x*scale + shift   (per-feature only)
    scale = std / (w + EPS * EPS)                              # (TB, 1, N)
    shift = mean - b * scale
    y_ref[...] = (x * scale + shift).astype(y_ref.dtype)      # 1 mul + 1 add / elem


# --------------------------------------------------------------------------- #
# Block sizing (generation aware)
# --------------------------------------------------------------------------- #
def _tpu_generation():
    """Best-effort TPU generation from device_kind; 0 if unknown."""
    try:
        kind = jax.devices()[0].device_kind.lower()
    except Exception:
        return 0
    for g in (7, 6, 5, 4):
        if f"v{g}" in kind or f"tpu{g}" in kind or f"tpu {g}" in kind:
            return g
    return 0


def _block_config(B, T, N):
    """Pick (batch rows per block, vmem_limit_bytes).

    HBM-bandwidth-bound kernel: take the largest block the scoped-VMEM budget
    allows (per-grid-step overhead ~0.35us), with a smaller target on v7x
    (64 MiB VMEM per TensorCore) and >=2 / even grid steps there so both
    TensorCores get work under dimension_semantics=('parallel',).  v5e/v6e are
    single-TC, so no step-count cap is imposed (grid is a serial loop there).
    """
    gen = _tpu_generation()
    if gen >= 7:
        target_bytes, vmem_limit = 3 << 20, 40 << 20
    elif gen in (5, 6):
        target_bytes, vmem_limit = 6 << 20, 96 << 20
    else:
        target_bytes, vmem_limit = 4 << 20, 64 << 20

    t_pad = -(-T // 8) * 8
    n_pad = -(-N // 128) * 128
    # f32 data-block row + padded (2, N) stats row, per batch element.
    per_row = t_pad * n_pad * 4 + 8 * n_pad * 4
    tb = max(1, min(B, target_bytes // per_row))

    if gen >= 7 and B > 1:
        steps = max(2, -(-B // tb))
        steps += steps % 2                  # even step count -> both TCs busy
        steps = min(steps, B)
        tb = -(-B // steps)
    return int(tb), int(vmem_limit)


# --------------------------------------------------------------------------- #
# Wrappers
# --------------------------------------------------------------------------- #
@functools.partial(jax.jit, static_argnames=("block_batch",))
def revin_norm(x, weight, bias, *, block_batch=None):
    """x: (B, T, N).  Returns (y, stats) with stats (B, 2, N) = [mean; std]."""
    B, T, N = x.shape
    w = jnp.asarray(weight, jnp.float32).reshape(1, 1, N)
    b = jnp.asarray(bias, jnp.float32).reshape(1, 1, N)
    TB, vmem_limit = _block_config(B, T, N)
    if block_batch is not None:
        TB = int(block_batch)
    grid = (pl.cdiv(B, TB),)   # ragged last block OK: OOB rows never written back

    y, stats = pl.pallas_call(
        _norm_kernel,
        out_shape=(
            jax.ShapeDtypeStruct((B, T, N), x.dtype),
            jax.ShapeDtypeStruct((B, 2, N), jnp.float32),
        ),
        grid_spec=pltpu.PrefetchScalarGridSpec(
            num_scalar_prefetch=0,
            grid=grid,
            in_specs=[
                pl.BlockSpec((TB, T, N), lambda i: (i, 0, 0)),
                pl.BlockSpec((1, 1, N), lambda i: (0, 0, 0)),
                pl.BlockSpec((1, 1, N), lambda i: (0, 0, 0)),
            ],
            out_specs=[
                pl.BlockSpec((TB, T, N), lambda i: (i, 0, 0)),
                pl.BlockSpec((TB, 2, N), lambda i: (i, 0, 0)),
            ],
        ),
        compiler_params=pltpu.CompilerParams(
            dimension_semantics=("parallel",),
            vmem_limit_bytes=vmem_limit),
    )(x, w, b)
    return y, stats


@functools.partial(jax.jit, static_argnames=("block_batch",))
def revin_denorm(x, stats, weight, bias, *, block_batch=None):
    """x: (B, T, N), stats: (B, 2, N) packed [mean; std]."""
    B, T, N = x.shape
    w = jnp.asarray(weight, jnp.float32).reshape(1, 1, N)
    b = jnp.asarray(bias, jnp.float32).reshape(1, 1, N)
    TB, vmem_limit = _block_config(B, T, N)
    if block_batch is not None:
        TB = int(block_batch)
    grid = (pl.cdiv(B, TB),)

    y = pl.pallas_call(
        _denorm_kernel,
        out_shape=jax.ShapeDtypeStruct((B, T, N), x.dtype),
        grid_spec=pltpu.PrefetchScalarGridSpec(
            num_scalar_prefetch=0,
            grid=grid,
            in_specs=[
                pl.BlockSpec((TB, T, N), lambda i: (i, 0, 0)),
                pl.BlockSpec((TB, 2, N), lambda i: (i, 0, 0)),
                pl.BlockSpec((1, 1, N), lambda i: (0, 0, 0)),
                pl.BlockSpec((1, 1, N), lambda i: (0, 0, 0)),
            ],
            out_specs=pl.BlockSpec((TB, T, N), lambda i: (i, 0, 0)),
        ),
        compiler_params=pltpu.CompilerParams(
            dimension_semantics=("parallel",),
            vmem_limit_bytes=vmem_limit),
    )(x, stats, w, b)
    return y


class RevIN:
    """JAX/Pallas port of RevIN (affine=True, subtract_last=False, dist=None)."""

    def __init__(self, num_features: int, eps: float = 1e-5, affine: bool = True):
        assert affine, "only the default affine=True path is implemented"
        assert eps == EPS, "kernels are compiled with eps=1e-5"
        self.num_features = num_features
        self.eps = eps
        # nn.Parameter(torch.ones / torch.zeros), pre-shaped/cast once (hoisted).
        self.affine_weight = jnp.ones((num_features,), jnp.float32)
        self.affine_bias = jnp.zeros((num_features,), jnp.float32)
        self._w3 = self.affine_weight.reshape(1, 1, num_features)
        self._b3 = self.affine_bias.reshape(1, 1, num_features)
        self.stats = None   # packed (B, 2, N): [:, 0, :] = mean, [:, 1, :] = std

    @property
    def mean(self):
        return None if self.stats is None else self.stats[:, 0:1, :]    # (B, 1, N)

    @property
    def stdev(self):
        return None if self.stats is None else self.stats[:, 1:2, :]    # (B, 1, N)

    def __call__(self, x, mode: str):
        if mode == "norm":
            y, self.stats = revin_norm(x, self._w3, self._b3)
            return y
        elif mode == "denorm":
            assert self.stats is not None, "call mode='norm' first"
            return revin_denorm(x, self.stats, self._w3, self._b3)
        else:
            raise NotImplementedError
        # TODO(synk): subtract_last=True and the distribution_type branches
        # (gaussian/laplace/student_t, m_lr_gaussian, quantile/i_quantile) are
        # not exercised by the default config and are omitted.


# --------------------------------------------------------------------------- #
# Plain-JAX reference + self-test
# --------------------------------------------------------------------------- #
def _ref_norm(x, w, b, eps=EPS):
    mean = jnp.mean(x, axis=1, keepdims=True)
    std = jnp.sqrt(jnp.var(x, axis=1, keepdims=True) + eps)
    return ((x - mean) / std) * w + b, mean, std


def _ref_denorm(x, mean, std, w, b, eps=EPS):
    return ((x - b) / (w + eps * eps)) * std + mean


if __name__ == "__main__":
    key = jax.random.PRNGKey(0)
    B, T, N = 6, 48, 7   # batch, seq_len, num_features (small, unaligned dims)
    x = jax.random.normal(key, (B, T, N), dtype=jnp.float32) * 3.0 + 1.5

    revin = RevIN(num_features=N)

    y_norm = revin(x, "norm")
    y_denorm = revin(y_norm, "denorm")
    jax.block_until_ready(y_norm)
    jax.block_until_ready(y_denorm)

    ref_y, ref_mean, ref_std = _ref_norm(x, revin.affine_weight, revin.affine_bias)
    ref_back = _ref_denorm(ref_y, ref_mean, ref_std,
                           revin.affine_weight, revin.affine_bias)

    assert jnp.allclose(revin.mean, ref_mean, atol=1e-5, rtol=1e-5)
    assert jnp.allclose(revin.stdev, ref_std, atol=1e-5, rtol=1e-5)
    # y uses single-pass var + rsqrt + fused scale/shift -> tiny reassociation diffs
    assert jnp.allclose(y_norm, ref_y, atol=1e-4, rtol=1e-4)
    assert jnp.allclose(y_denorm, ref_back, atol=1e-4, rtol=1e-4)
    # round trip recovers the input
    assert jnp.allclose(y_denorm, x, atol=1e-3, rtol=1e-3)

    # Exercise the cdiv / ragged-last-block grid path (B=6, TB=4 -> 2 steps,
    # last block padded): padded-tail rows must never leak into real outputs.
    y2, s2 = revin_norm(x, revin._w3, revin._b3, block_batch=4)
    d2 = revin_denorm(y2, s2, revin._w3, revin._b3, block_batch=4)
    jax.block_until_ready(d2)
    assert jnp.allclose(y2, y_norm, atol=1e-5, rtol=1e-5)
    assert jnp.allclose(s2, revin.stats, atol=1e-5, rtol=1e-5)
    assert jnp.allclose(d2, y_denorm, atol=1e-5, rtol=1e-5)

    print("KERNEL_OK")
</pallas_src>

<mosaic_0001>
module attributes {stable_mosaic.version = 11 : i64} {
  func.func @_norm_kernel(%arg0: i32, %arg1: memref<6x48x7xf32, #tpu.memory_space<vmem>>, %arg2: memref<1x1x7xf32, #tpu.memory_space<vmem>>, %arg3: memref<1x1x7xf32, #tpu.memory_space<vmem>>, %arg4: memref<6x48x7xf32, #tpu.memory_space<vmem>>, %arg5: memref<6x2x7xf32, #tpu.memory_space<vmem>>) attributes {dimension_semantics = [#tpu.dimension_semantics<parallel>], iteration_bounds = array<i64: 1>, scalar_prefetch = 0 : i64, scratch_operands = 0 : i64, tpu.core_type = #tpu.core_type<tc>, window_params = [{transform_indices = @transform_0, window_bounds = array<i64: 6, 48, 7>}, {pipeline_mode = #tpu.pipeline_mode<synchronous>, transform_indices = @transform_1, window_bounds = array<i64: 1, 1, 7>}, {pipeline_mode = #tpu.pipeline_mode<synchronous>, transform_indices = @transform_2, window_bounds = array<i64: 1, 1, 7>}, {transform_indices = @transform_3, window_bounds = array<i64: 6, 48, 7>}, {transform_indices = @transform_4, window_bounds = array<i64: 6, 2, 7>}]} {
    %c0 = arith.constant 0 : index
    %c0_0 = arith.constant 0 : index
    %c0_1 = arith.constant 0 : index
    %0 = vector.load %arg1[%c0, %c0_0, %c0_1] : memref<6x48x7xf32, #tpu.memory_space<vmem>>, vector<6x48x7xf32>
    %cst = arith.constant dense<0.000000e+00> : vector<6x7xf32>
    %1 = vector.multi_reduction <add>, %0, %cst [1] : vector<6x48x7xf32> to vector<6x7xf32>
    %2 = vector.shape_cast %1 : vector<6x7xf32> to vector<6x1x7xf32>
    %cst_2 = arith.constant 0.020833334 : f32
    %3 = vector.broadcast %cst_2 : f32 to vector<6x1x7xf32>
    %4 = arith.mulf %2, %3 : vector<6x1x7xf32>
    %5 = arith.mulf %0, %0 : vector<6x48x7xf32>
    %cst_3 = arith.constant dense<0.000000e+00> : vector<6x7xf32>
    %6 = vector.multi_reduction <add>, %5, %cst_3 [1] : vector<6x48x7xf32> to vector<6x7xf32>
    %7 = vector.shape_cast %6 : vector<6x7xf32> to vector<6x1x7xf32>
    %cst_4 = arith.constant 0.020833334 : f32
    %8 = vector.broadcast %cst_4 : f32 to vector<6x1x7xf32>
    %9 = arith.mulf %7, %8 : vector<6x1x7xf32>
    %10 = arith.mulf %4, %4 : vector<6x1x7xf32>
    %11 = arith.subf %9, %10 : vector<6x1x7xf32>
    %cst_5 = arith.constant 0.000000e+00 : f32
    %12 = vector.broadcast %cst_5 : f32 to vector<6x1x7xf32>
    %13 = arith.maximumf %11, %12 : vector<6x1x7xf32>
    %cst_6 = arith.constant 9.99999974E-6 : f32
    %14 = vector.broadcast %cst_6 : f32 to vector<6x1x7xf32>
    %15 = arith.addf %13, %14 : vector<6x1x7xf32>
    %16 = math.sqrt %15 : vector<6x1x7xf32>
    %cst_7 = arith.constant 9.99999974E-6 : f32
    %17 = vector.broadcast %cst_7 : f32 to vector<6x1x7xf32>
    %18 = arith.addf %13, %17 : vector<6x1x7xf32>
    %19 = math.rsqrt %18 : vector<6x1x7xf32>
    %c0_8 = arith.constant 0 : index
    %c0_9 = arith.constant 0 : index
    %c0_10 = arith.constant 0 : index
    %20 = vector.load %arg2[%c0_8, %c0_9, %c0_10] : memref<1x1x7xf32, #tpu.memory_space<vmem>>, vector<1x1x7xf32>
    %c0_11 = arith.constant 0 : index
    %c0_12 = arith.constant 0 : index
    %c0_13 = arith.constant 0 : index
    %21 = vector.load %arg3[%c0_11, %c0_12, %c0_13] : memref<1x1x7xf32, #tpu.memory_space<vmem>>, vector<1x1x7xf32>
    %22 = vector.broadcast %20 : vector<1x1x7xf32> to vector<6x1x7xf32>
    %23 = arith.mulf %22, %19 : vector<6x1x7xf32>
    %24 = arith.mulf %4, %23 : vector<6x1x7xf32>
    %25 = vector.broadcast %21 : vector<1x1x7xf32> to vector<6x1x7xf32>
    %26 = arith.subf %25, %24 : vector<6x1x7xf32>
    %27 = vector.broadcast %23 : vector<6x1x7xf32> to vector<6x48x7xf32>
    %28 = arith.mulf %0, %27 : vector<6x48x7xf32>
    %29 = vector.broadcast %26 : vector<6x1x7xf32> to vector<6x48x7xf32>
    %30 = arith.addf %28, %29 : vector<6x48x7xf32>
    %c0_14 = arith.constant 0 : index
    %c0_15 = arith.constant 0 : index
    %c0_16 = arith.constant 0 : index
    %31 = vector.load %arg4[%c0_14, %c0_15, %c0_16] : memref<6x48x7xf32, #tpu.memory_space<vmem>>, vector<6x48x7xf32>
    tpu.vector_store %arg4[%c0_14, %c0_15, %c0_16], %30 {strides = array<i32>} : memref<6x48x7xf32, #tpu.memory_space<vmem>>, vector<6x48x7xf32>,
    %32 = tpu.concatenate %4, %16 in 1 : vector<6x1x7xf32>, vector<6x1x7xf32> -> vector<6x2x7xf32>
    %c0_17 = arith.constant 0 : index
    %c0_18 = arith.constant 0 : index
    %c0_19 = arith.constant 0 : index
    %33 = vector.load %arg5[%c0_17, %c0_18, %c0_19] : memref<6x2x7xf32, #tpu.memory_space<vmem>>, vector<6x2x7xf32>
    tpu.vector_store %arg5[%c0_17, %c0_18, %c0_19], %32 {strides = array<i32>} : memref<6x2x7xf32, #tpu.memory_space<vmem>>, vector<6x2x7xf32>,
    return
  }
  func.func @transform_0(%arg0: i32) -> (i32, i32, i32) {
    %c0_i32 = arith.constant 0 : i32
    %c0_i32_0 = arith.constant 0 : i32
    %c0_i32_1 = arith.constant 0 : i32
    return %arg0, %c0_i32, %c0_i32_0 : i32, i32, i32
  }
  func.func @transform_1(%arg0: i32) -> (i32, i32, i32) {
    %c0_i32 = arith.constant 0 : i32
    %c0_i32_0 = arith.constant 0 : i32
    %c0_i32_1 = arith.constant 0 : i32
    %c0_i32_2 = arith.constant 0 : i32
    return %c0_i32, %c0_i32_0, %c0_i32_1 : i32, i32, i32
  }
  func.func @transform_2(%arg0: i32) -> (i32, i32, i32) {
    %c0_i32 = arith.constant 0 : i32
    %c0_i32_0 = arith.constant 0 : i32
    %c0_i32_1 = arith.constant 0 : i32
    %c0_i32_2 = arith.constant 0 : i32
    return %c0_i32, %c0_i32_0, %c0_i32_1 : i32, i32, i32
  }
  func.func @transform_3(%arg0: i32) -> (i32, i32, i32) {
    %c0_i32 = arith.constant 0 : i32
    %c0_i32_0 = arith.constant 0 : i32
    %c0_i32_1 = arith.constant 0 : i32
    return %arg0, %c0_i32, %c0_i32_0 : i32, i32, i32
  }
  func.func @transform_4(%arg0: i32) -> (i32, i32, i32) {
    %c0_i32 = arith.constant 0 : i32
    %c0_i32_0 = arith.constant 0 : i32
    %c0_i32_1 = arith.constant 0 : i32
    return %arg0, %c0_i32, %c0_i32_0 : i32, i32, i32
  }
}

</mosaic_0001>

<bundles_post_ra>
// kernel: revin_norm.1
= control target key start
LH: loop header
LB: loop body
LE: loop exit
PB: predicated region body
PF: predicated region fallthrough
CT: control target
= control target key end

     0   :  { %10 = vsyncpa [#allocation3], 0  ;;  %s1368_s0 = inlined_call_operand.hbm [shape: f32[6,48,7], index: 0, kind: input, shape index: {}]   ;;  %s1369_s1 = inlined_call_operand.hbm [shape: f32[1,1,7], index: 1, kind: input, shape index: {}]   ;;  %s1370_s2 = inlined_call_operand.hbm [shape: f32[1,1,7], index: 2, kind: input, shape index: {}]   ;;  %s1371_s3 = inlined_call_operand.hbm [shape: f32[6,48,7], index: 3, kind: output, shape index: {0}]   ;;  %s1372_s4 = inlined_call_operand.hbm [shape: f32[6,2,7], index: 4, kind: output, shape index: {1}]  }
   0x1   :  { %11 = vsyncpa [#allocation6], 0 }
   0x2   :  { %12 = vsyncpa [#allocation4], 0 }
   0x3   :  { %13 = vsyncpa [#allocation10], 0  ;;  %s803_s15 = smov [#allocation5]   ;;  %s804_s17 = smov [#allocation2]  }
   0x4   :  { %s32_s16 = sshll.u32 %s803_s15, 4  ;;  %s19_s18 = sshll.u32 %s804_s17, 4  ;;  %s33_s16 = int_to_ptr.vmem [resolvable:$true] %s32_s16  ;;  %s837_s18 = int_to_ptr.vmem [resolvable:$true] %s19_s18 }
   0x5   :  { %s685_s21 = scalar_lea.hbm %s1369_s1, 16 }
   0x6   :  { %p686_p0 = scmp.ne.s32.totalorder %s1369_s1, %s685_s21  ;;  %p689_p1 = scmp.lt.u32.totalorder %s685_s21, %s1369_s1 }
   0x8   :  { %p691_p2 = pnand %p689_p1, %p686_p0 }
   0xa   :  { %694 = shalt.err (!%p691_p2)
}
   0xb   :  { %s695_s26 = scalar_lea.vmem %s33_s16, 16  ;;  %s699_s27 = scalar_lea.vmem %s33_s16, 32 }
   0xc   :  { %p696_p3 = scmp.ne.s32.totalorder %s33_s16, %s695_s26  ;;  %p700_p4 = scmp.lt.s32.totalorder %s33_s16, %s33_s16 }
   0xd   :  { %p701_p5 = scmp.lt.s32.totalorder %s699_s27, %s695_s26 }
   0xf   :  { %p702_p6 = por %p701_p5, %p700_p4 }
  0x11   :  { %p703_p7 = pnand %p702_p6, %p696_p3 }
  0x13   :  { %706 = shalt.err (!%p703_p7)
}
  0x14   :  { %35 = dma.hbm_to_vmem [thread:$0]  %s1369_s1, 16, %s33_s16, [#allocation6]  }
  0x15   :  { %s707_s6 = scalar_lea.hbm %s1368_s0, 4608 }
  0x16   :  { %p708_p8 = scmp.ne.s32.totalorder %s1368_s0, %s707_s6  ;;  %p711_p9 = scmp.lt.u32.totalorder %s707_s6, %s1368_s0 }
  0x18   :  { %p713_p10 = pnand %p711_p9, %p708_p8 }
  0x1a   :  { %716 = shalt.err (!%p713_p10)
}
  0x1b   :  { %s717_s11 = scalar_lea.vmem %s837_s18, 4608  ;;  %p722_p12 = scmp.lt.s32.totalorder %s837_s18, %s837_s18 }
  0x1c   :  { %p718_p11 = scmp.ne.s32.totalorder %s837_s18, %s717_s11  ;;  %p723_p13 = scmp.lt.s32.totalorder %s717_s11, %s717_s11 }
  0x1e   :  { %p724_p0 = por %p723_p13, %p722_p12 }
  0x20   :  { %p725_p1 = pnand %p724_p0, %p718_p11 }
  0x22   :  { %728 = shalt.err (!%p725_p1)
}
  0x23   :  { %s805_s1 = smov 128   ;;  %s806_s12 = smov 8  }
  0x24   :  { %25 = dma.hbm_to_vmem [thread:$0]  %s1368_s0, 4608, %s837_s18, [#allocation3], %s805_s1, %s805_s1, %s806_s12  }
  0x25   :  { %s807_s15 = smov [#allocation7]   ;;  %s729_s20 = scalar_lea.hbm %s1370_s2, 16 }
  0x26   :  { %s42_s16 = sshll.u32 %s807_s15, 4  ;;  %p730_p2 = scmp.ne.s32.totalorder %s1370_s2, %s729_s20  ;;  %s43_s16 = int_to_ptr.vmem [resolvable:$true] %s42_s16 }
  0x27   :  { %p733_p3 = scmp.lt.u32.totalorder %s729_s20, %s1370_s2 }
  0x29   :  { %p735_p4 = pnand %p733_p3, %p730_p2 }
  0x2b   :  { %738 = shalt.err (!%p735_p4)
}
  0x2c   :  { %s739_s25 = scalar_lea.vmem %s43_s16, 16  ;;  %s743_s0 = scalar_lea.vmem %s43_s16, 32 }
  0x2d   :  { %p740_p5 = scmp.ne.s32.totalorder %s43_s16, %s739_s25  ;;  %p744_p6 = scmp.lt.s32.totalorder %s43_s16, %s43_s16 }
  0x2e   :  { %p745_p7 = scmp.lt.s32.totalorder %s743_s0, %s739_s25 }
  0x30   :  { %p746_p8 = por %p745_p7, %p744_p6 }
  0x32   :  { %p747_p9 = pnand %p746_p8, %p740_p5 }
  0x34   :  { %750 = shalt.err (!%p747_p9)
}
  0x35   :  { %45 = dma.hbm_to_vmem [thread:$0]  %s1370_s2, 16, %s43_s16, [#allocation6]  }
  0x36   :  { %795 = dma.done.wait [#allocation3], 4608  }
  0x37   :  { %796 = vsyncadd [#allocation3], 4294962688 }
  0x38   :  { %797 = dma.done.wait [#allocation6], 32  }
  0x39   :  { %798 = vsyncadd [#allocation6], 4294967264  ;;  %v442_v0 = vlaneseq  ;;  %vm91_vm0 = vcmask 56320   ;;  %v883_v2 = vld [vmem:[#allocation2] sm:$0xff]  ;;  %v885_v3 = vld [vmem:[#allocation2 + $0x8] sm:$0xff]  ;;  %vm616_vm1 = vcmask 1040384  }
  0x3a   :  { %v887_v4 = vld [vmem:[#allocation2 + $0x10] sm:$0xff]  ;;  %v891_v6 = vld [vmem:[#allocation2 + $0x18] sm:$0xff]  ;;  %v893_v7 = vld [vmem:[#allocation2 + $0x20] sm:$0xff]  ;;  %v92_v9 = vsel %vm91_vm0, %v883_v2, 0.0  ;;  %v93_v10 = vsel %vm91_vm0, %v885_v3, 0.0  ;;  %v200_v12 = vmul.f32 %v883_v2, %v883_v2  ;;  %v201_v18 = vmul.f32 %v885_v3, %v885_v3  ;;  %s808_s2 = smov [#allocation9]  }
  0x3b   :  { %v443_v1 = vshrl.u32 %v442_v0, 7  ;;  %v895_v8 = vld [vmem:[#allocation2 + $0x28] sm:$0xff]  ;;  %v95_v11 = vsel %vm91_vm0, %v887_v4, 0.0  ;;  %v94_v13 = vadd.f32 %v93_v10, %v92_v9  ;;  %v97_v14 = vsel %vm91_vm0, %v891_v6, 0.0  ;;  %v911_v17 = vld [vmem:[#allocation2 + $0x30] sm:$0xff]  ;;  %v921_v22 = vld [vmem:[#allocation2 + $0x38] sm:$0xff] }
  0x3c   :  { %v99_v15 = vsel %vm91_vm0, %v893_v7, 0.0  ;;  %v101_v16 = vsel %vm91_vm0, %v895_v8, 0.0  ;;  %v202_v19 = vmul.f32 %v887_v4, %v887_v4  ;;  %v203_v20 = vmul.f32 %v891_v6, %v891_v6  ;;  %v926_v26 = vld [vmem:[#allocation2 + $0x40] sm:$0xff]  ;;  %v928_v27 = vld [vmem:[#allocation2 + $0x48] sm:$0xff]  ;;  %v930_v28 = vld [vmem:[#allocation2 + $0x50] sm:$0xff]  ;;  %s647_s27 = sshll.u32 %s808_s2, 4  ;;  %s1317_s27 = int_to_ptr.vmem [resolvable:$true] %s647_s27 }
  0x3d   :  { %v889_v5 = vsub.s32 0, %v443_v1  ;;  %v204_v21 = vmul.f32 %v893_v7, %v893_v7  ;;  %v96_v23 = vadd.f32 %v95_v11, %v94_v13  ;;  %v205_v24 = vmul.f32 %v895_v8, %v895_v8  ;;  %v938_v34 = vld [vmem:[#allocation2 + $0x58] sm:$0xff]  ;;  %v963_v55 = vld [vmem:[#allocation2 + $0x60] sm:$0xff]  ;;  %v968_v60 = vld [vmem:[#allocation2 + $0x68] sm:$0xff]  ;;  %s809_s28 = smov [#allocation8]   ;;  %s751_s30 = scalar_lea.vmem %s1317_s27, 192 }
  0x3e   :  { %v236_v25 = vsel %vm91_vm0, %v200_v12, 0.0  ;;  %v109_v29 = vsel %vm91_vm0, %v911_v17, 0.0  ;;  %v237_v30 = vsel %vm91_vm0, %v201_v18, 0.0  ;;  %v239_v31 = vsel %vm91_vm0, %v202_v19, 0.0  ;;  %v971_v1 = vld [vmem:[#allocation2 + $0x70] sm:$0xff]  ;;  %v973_v9 = vld [vmem:[#allocation2 + $0x78] sm:$0xff]  ;;  %p752_p10 = scmp.ne.s32.totalorder %s1317_s27, %s751_s30  ;;  %p756_p11 = scmp.lt.s32.totalorder %s1317_s27, %s1317_s27 }
  0x3f   :  { %v241_v32 = vsel %vm91_vm0, %v203_v20, 0.0  ;;  %v243_v33 = vsel %vm91_vm0, %v204_v21, 0.0  ;;  %v98_v35 = vadd.f32 %v97_v14, %v96_v23  ;;  %v238_v36 = vadd.f32 %v237_v30, %v236_v25  ;;  %v977_v13 = vld [vmem:[#allocation2 + $0x80] sm:$0xff]  ;;  %v981_v19 = vld [vmem:[#allocation2 + $0x88] sm:$0xff]  ;;  %s635_s29 = sshll.u32 %s809_s28, 4  ;;  %p757_p12 = scmp.lt.s32.totalorder %s751_s30, %s751_s30  ;;  %s636_s29 = int_to_ptr.vmem [resolvable:$true] %s635_s29 }
  0x40   :  { %v245_v37 = vsel %vm91_vm0, %v205_v24, 0.0  ;;  %v110_v38 = vsel %vm91_vm0, %v921_v22, 0.0  ;;  %v112_v40 = vsel %vm91_vm0, %v926_v26, 0.0  ;;  %v114_v41 = vsel %vm91_vm0, %v928_v27, 0.0 }
  0x41   :  { %v111_v39 = vadd.f32 %v110_v38, %v109_v29  ;;  %v116_v42 = vsel %vm91_vm0, %v930_v28, 0.0  ;;  %v100_v43 = vadd.f32 %v99_v15, %v98_v35  ;;  %v240_v44 = vadd.f32 %v239_v31, %v238_v36  ;;  %p758_p13 = por %p757_p12, %p756_p11 }
  0x42   :  { %v118_v45 = vsel %vm91_vm0, %v938_v34, 0.0  ;;  %v206_v46 = vmul.f32 %v911_v17, %v911_v17  ;;  %v207_v48 = vmul.f32 %v921_v22, %v921_v22  ;;  %v208_v49 = vmul.f32 %v926_v26, %v926_v26 }
  0x43   :  { %v113_v47 = vadd.f32 %v112_v40, %v111_v39  ;;  %v209_v50 = vmul.f32 %v928_v27, %v928_v27  ;;  %v102_v51 = vadd.f32 %v101_v16, %v100_v43  ;;  %v242_v52 = vadd.f32 %v241_v32, %v240_v44  ;;  %p759_p0 = pnand %p758_p13, %p752_p10 }
  0x44   :  { %v210_v53 = vmul.f32 %v930_v28, %v930_v28  ;;  %v211_v54 = vmul.f32 %v938_v34, %v938_v34  ;;  %v253_v57 = vsel %vm91_vm0, %v206_v46, 0.0  ;;  %v254_v58 = vsel %vm91_vm0, %v207_v48, 0.0 }
  0x45   :  { %v115_v56 = vadd.f32 %v114_v41, %v113_v47  ;;  %v256_v59 = vsel %vm91_vm0, %v208_v49, 0.0  ;;  %v103_v61 = vrot.slane %v102_v51, 4  ;;  %v244_v62 = vadd.f32 %v243_v33, %v242_v52 }
  0x46   :  { %v255_v63 = vadd.f32 %v254_v58, %v253_v57  ;;  %v258_v0 = vsel %vm91_vm0, %v209_v50, 0.0  ;;  %v260_v11 = vsel %vm91_vm0, %v210_v53, 0.0  ;;  %v262_v12 = vsel %vm91_vm0, %v211_v54, 0.0 }
  0x47   :  { %v117_v10 = vadd.f32 %v116_v42, %v115_v56  ;;  %v126_v14 = vsel %vm91_vm0, %v963_v55, 0.0  ;;  %v104_v15 = vadd.f32 %v103_v61, %v102_v51  ;;  %v246_v16 = vadd.f32 %v245_v37, %v244_v62 }
  0x48   :  { %v257_v18 = vadd.f32 %v256_v59, %v255_v63  ;;  %v127_v20 = vsel %vm91_vm0, %v968_v60, 0.0  ;;  %v129_v24 = vsel %vm91_vm0, %v971_v1, 0.0  ;;  %v131_v25 = vsel %vm91_vm0, %v973_v9, 0.0 }
  0x49   :  { %v119_v21 = vadd.f32 %v118_v45, %v117_v10  ;;  %v128_v23 = vadd.f32 %v127_v20, %v126_v14  ;;  %v105_v29 = vrot.slane %v104_v15, 2  ;;  %v247_v30 = vrot.slane %v246_v16, 4  ;;  %v1011_v14 = vld [vmem:[#allocation2 + $0x90] sm:$0xff] }
  0x4a   :  { %v259_v31 = vadd.f32 %v258_v0, %v257_v18  ;;  %v133_v32 = vsel %vm91_vm0, %v977_v13, 0.0  ;;  %v135_v36 = vsel %vm91_vm0, %v981_v19, 0.0  ;;  %v212_v37 = vmul.f32 %v963_v55, %v963_v55 }
  0x4b   :  { %v120_v33 = vrot.slane %v119_v21, 4  ;;  %v130_v35 = vadd.f32 %v129_v24, %v128_v23  ;;  %v106_v38 = vadd.f32 %v105_v29, %v104_v15  ;;  %v248_v39 = vadd.f32 %v247_v30, %v246_v16  ;;  %v1016_v23 = vld [vmem:[#allocation2 + $0xa0] sm:$0xff] }
  0x4c   :  { %v261_v40 = vadd.f32 %v260_v11, %v259_v31  ;;  %v213_v41 = vmul.f32 %v968_v60, %v968_v60  ;;  %v214_v44 = vmul.f32 %v971_v1, %v971_v1  ;;  %v215_v45 = vmul.f32 %v973_v9, %v973_v9 }
  0x4d   :  { %v121_v42 = vadd.f32 %v120_v33, %v119_v21  ;;  %v132_v43 = vadd.f32 %v131_v25, %v130_v35  ;;  %v107_v46 = vrot.slane %v106_v38, 1  ;;  %v249_v47 = vrot.slane %v248_v39, 2  ;;  %v1014_v21 = vld [vmem:[#allocation2 + $0x98] sm:$0xff]  ;;  %v1021_v35 = vld [vmem:[#allocation2 + $0xa8] sm:$0xff] }
  0x4e   :  { %v263_v48 = vadd.f32 %v262_v12, %v261_v40  ;;  %v216_v49 = vmul.f32 %v977_v13, %v977_v13  ;;  %v217_v52 = vmul.f32 %v981_v19, %v981_v19  ;;  %v270_v53 = vsel %vm91_vm0, %v212_v37, 0.0 }
  0x4f   :  { %v122_v50 = vrot.slane %v121_v42, 2  ;;  %v134_v51 = vadd.f32 %v133_v32, %v132_v43  ;;  %v108_v54 = vadd.f32 %v107_v46, %v106_v38  ;;  %v250_v56 = vadd.f32 %v249_v47, %v248_v39 }
  0x50   :  { %v264_v57 = vrot.slane %v263_v48, 4  ;;  %v271_v58 = vsel %vm91_vm0, %v213_v41, 0.0  ;;  %v273_v63 = vsel %vm91_vm0, %v214_v44, 0.0  ;;  %v275_v12 = vsel %vm91_vm0, %v215_v45, 0.0  ;;  %v1033_v45 = vld [vmem:[#allocation2 + $0xb8] sm:$0xff] }
  0x51   :  { %v123_v59 = vadd.f32 %v122_v50, %v121_v42  ;;  %v136_v61 = vadd.f32 %v135_v36, %v134_v51  ;;  %v272_v62 = vadd.f32 %v271_v58, %v270_v53  ;;  %v1008_v0 = vmul.f32 0.020833334, %v108_v54  ;;  %v1023_v36 = vld [vmem:[#allocation2 + $0xb0] sm:$0xff] }
  0x52   :  { %v251_v10 = vrot.slane %v250_v56, 1  ;;  %v265_v11 = vadd.f32 %v264_v57, %v263_v48  ;;  %v277_v20 = vsel %vm91_vm0, %v216_v49, 0.0  ;;  %v279_v30 = vsel %vm91_vm0, %v217_v52, 0.0 }
  0x53   :  { %v124_v15 = vrot.slane %v123_v59, 1  ;;  %v137_v16 = vrot.slane %v136_v61, 4  ;;  %v274_v18 = vadd.f32 %v273_v63, %v272_v62  ;;  %v344_v25 = vmul.f32 %v1008_v0, %v1008_v0 }
  0x54   :  { %v252_v24 = vadd.f32 %v251_v10, %v250_v56  ;;  %v266_v29 = vrot.slane %v265_v11, 2  ;;  %v143_v37 = vsel %vm91_vm0, %v1011_v14, 0.0  ;;  %v144_v40 = vsel %vm91_vm0, %v1014_v21, 0.0 }
  0x55   :  { %v125_v31 = vadd.f32 %v124_v15, %v123_v59  ;;  %v138_v32 = vadd.f32 %v137_v16, %v136_v61  ;;  %v276_v33 = vadd.f32 %v275_v12, %v274_v18  ;;  %v146_v41 = vsel %vm91_vm0, %v1016_v23, 0.0 }
  0x56   :  { %v338_v38 = vmul.f32 0.020833334, %v252_v24  ;;  %v267_v39 = vadd.f32 %v266_v29, %v265_v11  ;;  %v145_v46 = vadd.f32 %v144_v40, %v143_v37  ;;  %v148_v49 = vsel %vm91_vm0, %v1021_v35, 0.0 }
  0x57   :  { %v1031_v42 = vmul.f32 0.020833334, %v125_v31  ;;  %v139_v43 = vrot.slane %v138_v32, 2  ;;  %v278_v44 = vadd.f32 %v277_v20, %v276_v33  ;;  %v150_v50 = vsel %vm91_vm0, %v1023_v36, 0.0 }
  0x58   :  { %v350_v47 = vsub.f32 %v338_v38, %v344_v25  ;;  %v268_v48 = vrot.slane %v267_v39, 1  ;;  %v147_v54 = vadd.f32 %v146_v41, %v145_v46  ;;  %v152_v58 = vsel %vm91_vm0, %v1033_v45, 0.0  ;;  %v1066_v46 = vld [vmem:[#allocation2 + $0xc8] sm:$0xff] }
  0x59   :  { %v345_v51 = vmul.f32 %v1031_v42, %v1031_v42  ;;  %v140_v52 = vadd.f32 %v139_v43, %v138_v32  ;;  %v280_v53 = vadd.f32 %v279_v30, %v278_v44  ;;  %v218_v59 = vmul.f32 %v1011_v14, %v1011_v14 }
  0x5a   :  { %v356_v56 = vmax.f32 %v350_v47, 0.0  ;;  %v269_v57 = vadd.f32 %v268_v48, %v267_v39  ;;  %v149_v63 = vadd.f32 %v148_v49, %v147_v54  ;;  %v219_v10 = vmul.f32 %v1014_v21, %v1014_v21  ;;  %v1062_v39 = vld [vmem:[#allocation2 + $0xc0] sm:$0xff]  ;;  %v1068_v47 = vld [vmem:[#allocation2 + $0xd0] sm:$0xff] }
  0x5b   :  { %v141_v61 = vrot.slane %v140_v52, 1  ;;  %v281_v62 = vrot.slane %v280_v53, 4  ;;  %v220_v15 = vmul.f32 %v1016_v23, %v1016_v23  ;;  %v221_v16 = vmul.f32 %v1021_v35, %v1021_v35 }
  0x5c   :  { %v1047_v11 = vadd.f32 1e-05, %v356_v56  ;;  %v339_v12 = vmul.f32 0.020833334, %v269_v57  ;;  %v151_v24 = vadd.f32 %v150_v50, %v149_v63  ;;  %v222_v25 = vmul.f32 %v1023_v36, %v1023_v36  ;;  %v1078_v57 = vld [vmem:[#allocation2 + $0xe0] sm:$0xff] }
  0x5d   :  { %v142_v18 = vadd.f32 %v141_v61, %v140_v52  ;;  %v282_v20 = vadd.f32 %v281_v62, %v280_v53  ;;  %v223_v30 = vmul.f32 %v1033_v45, %v1033_v45  ;;  %v287_v31 = vsel %vm91_vm0, %v218_v59, 0.0  ;;  %v1073_v52 = vld [vmem:[#allocation2 + $0xd8] sm:$0xff]  ;;  %1377 = vst [vmem:[#allocation16_spill] sm:$0xff] %v1078_v57 }
  0x5e   :  { %673 = vrsqrt.f32 %v1047_v11  ;;  %v351_v29 = vsub.f32 %v339_v12, %v345_v51  ;;  %v153_v37 = vadd.f32 %v152_v58, %v151_v24  ;;  %v288_v38 = vsel %vm91_vm0, %v219_v10, 0.0  ;;  %1376 = vst [vmem:[#allocation15_spill] sm:$0xff] %v1073_v52  ;;  %v1080_v58 = vld [vmem:[#allocation2 + $0xe8] sm:$0xff] }
  0x5f   :  { %v1059_v32 = vmul.f32 0.020833334, %v142_v18  ;;  %v283_v33 = vrot.slane %v282_v20, 2  ;;  %v289_v41 = vadd.f32 %v288_v38, %v287_v31  ;;  %v290_v43 = vsel %vm91_vm0, %v220_v15, 0.0  ;;  %1378 = vst [vmem:[#allocation17_spill] sm:$0xff] %v1080_v58 }
  0x60   :  { %v357_v40 = vmax.f32 %v351_v29, 0.0  ;;  %v292_v44 = vsel %vm91_vm0, %v221_v16, 0.0  ;;  %v154_v50 = vrot.slane %v153_v37, 4  ;;  %v294_v51 = vsel %vm91_vm0, %v222_v25, 0.0  ;;  %v1095_v29 = vld [vmem:[#allocation5] sm:$0x1] }
  0x61   :  { %v284_v48 = vadd.f32 %v283_v33, %v282_v20  ;;  %v346_v49 = vmul.f32 %v1059_v32, %v1059_v32  ;;  %v291_v54 = vadd.f32 %v290_v43, %v289_v41  ;;  %v296_v56 = vsel %vm91_vm0, %v223_v30, 0.0 }
  0x62   :  { %v1075_v53 = vadd.f32 1e-05, %v357_v40  ;;  %v160_v59 = vsel %vm91_vm0, %v1062_v39, 0.0  ;;  %v155_v62 = vadd.f32 %v154_v50, %v153_v37  ;;  %v161_v63 = vsel %vm91_vm0, %v1066_v46, 0.0 }
  0x63   :  { %v285_v61 = vrot.slane %v284_v48, 1  ;;  %v163_v10 = vsel %vm91_vm0, %v1068_v47, 0.0  ;;  %v293_v12 = vadd.f32 %v292_v44, %v291_v54  ;;  %v162_v15 = vadd.f32 %v161_v63, %v160_v59 }
  0x64   :  { %675 = vrsqrt.f32 %v1075_v53  ;;  %v165_v16 = vsel %vm91_vm0, %v1073_v52, 0.0  ;;  %v156_v20 = vrot.slane %v155_v62, 2  ;;  %v167_v24 = vsel %vm91_vm0, %v1078_v57, 0.0 }
  0x65   :  { %v286_v18 = vadd.f32 %v285_v61, %v284_v48  ;;  %v169_v25 = vsel %vm91_vm0, %v1080_v58, 0.0  ;;  %v295_v30 = vadd.f32 %v294_v51, %v293_v12  ;;  %v164_v31 = vadd.f32 %v163_v10, %v162_v15  ;;  %v1116_v10 = vld [vmem:[#allocation7] sm:$0x1] }
  0x66   :  { %v224_v33 = vmul.f32 %v1062_v39, %v1062_v39  ;;  %v225_v37 = vmul.f32 %v1066_v46, %v1066_v46  ;;  %v157_v40 = vadd.f32 %v156_v20, %v155_v62  ;;  %v226_v41 = vmul.f32 %v1068_v47, %v1068_v47 }
  0x67   :  { %v340_v38 = vmul.f32 0.020833334, %v286_v18  ;;  %v227_v43 = vmul.f32 %v1073_v52, %v1073_v52  ;;  %v297_v48 = vadd.f32 %v296_v56, %v295_v30  ;;  %v166_v50 = vadd.f32 %v165_v16, %v164_v31 }
  0x68   :  { %v1105_v44 = vpop.eup %673  ;;  %v228_v51 = vmul.f32 %v1078_v57, %v1078_v57  ;;  %v1111_v54 = vmul.f32 %v1080_v58, %v1080_v58  ;;  %v158_v62 = vrot.slane %v157_v40, 1  ;;  %v304_v63 = vsel %vm91_vm0, %v224_v33, 0.0 }
  0x69   :  { %v418_v59 = vmul.f32 %v1105_v44, %v1095_v29  ;;  %v352_v61 = vsub.f32 %v340_v38, %v346_v49  ;;  %v298_v12 = vrot.slane %v297_v48, 4  ;;  %v168_v15 = vadd.f32 %v167_v24, %v166_v50 }
  0x6a   :  { %v305_v56 = vsel %vm91_vm0, %v225_v37, 0.0  ;;  %v307_v16 = vsel %vm91_vm0, %v226_v41, 0.0  ;;  %v159_v31 = vadd.f32 %v158_v62, %v157_v40  ;;  %v309_v38 = vsel %vm91_vm0, %v227_v43, 0.0 }
  0x6b   :  { %v424_v18 = vmul.f32 %v418_v59, %v1008_v0  ;;  %v445_v20 = vrot.slane %v418_v59, %v889_v5  ;;  %v358_v30 = vmax.f32 %v352_v61, 0.0  ;;  %v299_v58 = vadd.f32 %v298_v12, %v297_v48 }
  0x6c   :  { %v170_v57 = vadd.f32 %v169_v25, %v168_v15  ;;  %v306_v49 = vadd.f32 %v305_v56, %v304_v63  ;;  %vm370_vm2 = vcmp.eq.f32.partialorder %v1047_v11, inf  ;;  %vm372_vm3 = vcmp.eq.f32.partialorder %v1047_v11, 0.0 }
  0x6d   :  { %v430_v33 = vsub.f32 %v1116_v10, %v424_v18  ;;  %v472_v52 = vmul.f32 %v445_v20, %v883_v2  ;;  %v473_v24 = vmul.f32 %v445_v20, %v885_v3  ;;  %v474_v37 = vmul.f32 %v445_v20, %v887_v4 }
  0x6e   :  { %v1127_v41 = vpop.eup %675  ;;  %v475_v50 = vmul.f32 %v445_v20, %v891_v6  ;;  %v476_v59 = vmul.f32 %v445_v20, %v893_v7  ;;  %v477_v40 = vmul.f32 %v445_v20, %v895_v8  ;;  %v1132_v25 = vadd.f32 1e-05, %v358_v30 }
  0x6f   :  { %v517_v43 = vrot.slane %v430_v33, %v889_v5  ;;  %v419_v48 = vmul.f32 %v1127_v41, %v1095_v29  ;;  %v1137_v2 = vmul.f32 0.020833334, %v159_v31  ;;  %v300_v3 = vrot.slane %v299_v58, 2 }
  0x70   :  { %677 = vrsqrt.f32 %v1132_v25  ;;  %v171_v4 = vrot.slane %v170_v57, 4  ;;  %v308_v61 = vadd.f32 %v307_v16, %v306_v49  ;;  %v311_v6 = vsel %vm91_vm0, %v228_v51, 0.0 }
  0x71   :  { %v544_v62 = vadd.f32 %v517_v43, %v472_v52  ;;  %v545_v7 = vadd.f32 %v517_v43, %v473_v24  ;;  %v546_v63 = vadd.f32 %v517_v43, %v474_v37  ;;  %v547_v8 = vadd.f32 %v517_v43, %v475_v50  ;;  %v1155_v24 = vld [vmem:[#allocation2 + $0xf0] sm:$0xff]  ;;  %v1159_v37 = vld [vmem:[#allocation2 + $0x100] sm:$0xff] }
  0x72   :  { %v548_v12 = vadd.f32 %v517_v43, %v476_v59  ;;  %v549_v15 = vadd.f32 %v517_v43, %v477_v40  ;;  %v425_v56 = vmul.f32 %v419_v48, %v1031_v42  ;;  %v449_v18 = vrot.slane %v419_v48, %v889_v5  ;;  %v1167_v48 = vld [vmem:[#allocation2 + $0x108] sm:$0xff] }
  0x73   :  { %580 = vst.msk [vmem:[#allocation8] sm:$0xff] %vm91_vm0, %v544_v62  ;;  %581 = vst.msk [vmem:[#allocation8 + $0x8] sm:$0xff] %vm91_vm0, %v545_v7  ;;  %v301_v16 = vadd.f32 %v300_v3, %v299_v58  ;;  %v347_v52 = vmul.f32 %v1137_v2, %v1137_v2  ;;  %v172_v51 = vadd.f32 %v171_v4, %v170_v57  ;;  %v1157_v58 = vld [vmem:[#allocation2 + $0xf8] sm:$0xff]  ;;  %v1169_v3 = vld [vmem:[#allocation2 + $0x110] sm:$0xff]  ;;  %vm623_vm4 = vcmask 50176  }
  0x74   :  { %582 = vst.msk [vmem:[#allocation8 + $0x10] sm:$0xff] %vm91_vm0, %v546_v63  ;;  %583 = vst.msk [vmem:[#allocation8 + $0x18] sm:$0xff] %vm91_vm0, %v547_v8  ;;  %v310_v20 = vadd.f32 %v309_v38, %v308_v61  ;;  %v431_v30 = vsub.f32 %v1116_v10, %v425_v56  ;;  %v478_v31 = vmul.f32 %v449_v18, %v911_v17  ;;  %v1177_v7 = vld [vmem:[#allocation2 + $0x118] sm:$0xff]  ;;  %vm377_vm5 = vcmp.eq.f32.partialorder %v1075_v53, inf }
  0x75   :  { %584 = vst.msk [vmem:[#allocation8 + $0x20] sm:$0xff] %vm91_vm0, %v548_v12  ;;  %585 = vst.msk [vmem:[#allocation8 + $0x28] sm:$0xff] %vm91_vm0, %v549_v15  ;;  %v479_v49 = vmul.f32 %v449_v18, %v921_v22  ;;  %v480_v33 = vmul.f32 %v449_v18, %v926_v26  ;;  %v481_v57 = vmul.f32 %v449_v18, %v928_v27  ;;  %v302_v59 = vrot.slane %v301_v16, 1 }
  0x76   :  { %v482_v38 = vmul.f32 %v449_v18, %v930_v28  ;;  %v483_v50 = vmul.f32 %v449_v18, %v938_v34  ;;  %v521_v40 = vrot.slane %v431_v30, %v889_v5  ;;  %v173_v17 = vrot.slane %v172_v51, 2 }
  0x77   :  { %v312_v43 = vadd.f32 %v311_v6, %v310_v20  ;;  %v313_v22 = vsel %vm91_vm0, %v1111_v54, 0.0  ;;  %v303_v26 = vadd.f32 %v302_v59, %v301_v16  ;;  %v177_v27 = vsel %vm91_vm0, %v1155_v24, 0.0 }
  0x78   :  { %v178_v28 = vsel %vm91_vm0, %v1157_v58, 0.0  ;;  %v180_v34 = vsel %vm91_vm0, %v1159_v37, 0.0  ;;  %v550_v4 = vadd.f32 %v521_v40, %v478_v31  ;;  %v551_v61 = vadd.f32 %v521_v40, %v479_v49 }
  0x79   :  { %v552_v6 = vadd.f32 %v521_v40, %v480_v33  ;;  %v553_v62 = vadd.f32 %v521_v40, %v481_v57  ;;  %v554_v54 = vadd.f32 %v521_v40, %v482_v38  ;;  %v555_v63 = vadd.f32 %v521_v40, %v483_v50 }
  0x7a   :  { %v341_v8 = vmul.f32 0.020833334, %v303_v26  ;;  %v174_v12 = vadd.f32 %v173_v17, %v172_v51  ;;  %v1179_v15 = vpop.eup %677  ;;  %586 = vst.msk [vmem:[#allocation8 + $0x30] sm:$0xff] %vm91_vm0, %v550_v4  ;;  %587 = vst.msk [vmem:[#allocation8 + $0x38] sm:$0xff] %vm91_vm0, %v551_v61  ;;  %v314_v56 = vadd.f32 %v313_v22, %v312_v43  ;;  %v179_v18 = vadd.f32 %v178_v28, %v177_v27 }
  0x7b   :  { %588 = vst.msk [vmem:[#allocation8 + $0x40] sm:$0xff] %vm91_vm0, %v552_v6  ;;  %589 = vst.msk [vmem:[#allocation8 + $0x48] sm:$0xff] %vm91_vm0, %v553_v62  ;;  %v182_v16 = vsel %vm91_vm0, %v1167_v48, 0.0  ;;  %v184_v20 = vsel %vm91_vm0, %v1169_v3, 0.0  ;;  %v420_v51 = vmul.f32 %v1179_v15, %v1095_v29  ;;  %v186_v49 = vsel %vm91_vm0, %v1177_v7, 0.0 }
  0x7c   :  { %590 = vst.msk [vmem:[#allocation8 + $0x50] sm:$0xff] %vm91_vm0, %v554_v54  ;;  %591 = vst.msk [vmem:[#allocation8 + $0x58] sm:$0xff] %vm91_vm0, %v555_v63  ;;  %v353_v30 = vsub.f32 %v341_v8, %v347_v52  ;;  %v175_v31 = vrot.slane %v174_v12, 1  ;;  %v315_v33 = vrot.slane %v314_v56, 4  ;;  %v181_v57 = vadd.f32 %v180_v34, %v179_v18 }
  0x7d   :  { %v230_v38 = vmul.f32 %v1155_v24, %v1155_v24  ;;  %v231_v50 = vmul.f32 %v1157_v58, %v1157_v58  ;;  %v426_v59 = vmul.f32 %v420_v51, %v1059_v32  ;;  %v453_v40 = vrot.slane %v420_v51, %v889_v5 }
  0x7e   :  { %v359_v17 = vmax.f32 %v353_v30, 0.0  ;;  %v176_v43 = vadd.f32 %v175_v31, %v174_v12  ;;  %v316_v22 = vadd.f32 %v315_v33, %v314_v56  ;;  %v183_v52 = vadd.f32 %v182_v16, %v181_v57 }
  0x7f   :  { %v232_v26 = vmul.f32 %v1159_v37, %v1159_v37  ;;  %v233_v27 = vmul.f32 %v1167_v48, %v1167_v48  ;;  %v432_v28 = vsub.f32 %v1116_v10, %v426_v59  ;;  %v484_v34 = vmul.f32 %v453_v40, %v963_v55 }
  0x80   :  { %v485_v4 = vmul.f32 %v453_v40, %v968_v60  ;;  %v486_v61 = vmul.f32 %v453_v40, %v971_v1  ;;  %v487_v6 = vmul.f32 %v453_v40, %v973_v9  ;;  %v488_v62 = vmul.f32 %v453_v40, %v977_v13 }
  0x81   :  { %v489_v54 = vmul.f32 %v453_v40, %v981_v19  ;;  %v1212_v63 = vadd.f32 1e-05, %v359_v17  ;;  %v525_v8 = vrot.slane %v432_v28, %v889_v5  ;;  %v1215_v12 = vmul.f32 0.020833334, %v176_v43 }
  0x82   :  { %v317_v56 = vrot.slane %v316_v22, 2  ;;  %v185_v18 = vadd.f32 %v184_v20, %v183_v52  ;;  %v234_v55 = vmul.f32 %v1169_v3, %v1169_v3  ;;  %v235_v60 = vmul.f32 %v1177_v7, %v1177_v7 }
  0x83   :  { %679 = vrsqrt.f32 %v1212_v63  ;;  %v321_v1 = vsel %vm91_vm0, %v230_v38, 0.0  ;;  %v556_v9 = vadd.f32 %v525_v8, %v484_v34  ;;  %v557_v13 = vadd.f32 %v525_v8, %v485_v4 }
  0x84   :  { %v558_v19 = vadd.f32 %v525_v8, %v486_v61  ;;  %v559_v16 = vadd.f32 %v525_v8, %v487_v6  ;;  %v560_v51 = vadd.f32 %v525_v8, %v488_v62  ;;  %v561_v30 = vadd.f32 %v525_v8, %v489_v54 }
  0x85   :  { %v318_v31 = vadd.f32 %v317_v56, %v316_v22  ;;  %v348_v20 = vmul.f32 %v1215_v12, %v1215_v12  ;;  %592 = vst.msk [vmem:[#allocation8 + $0x60] sm:$0xff] %vm91_vm0, %v556_v9  ;;  %593 = vst.msk [vmem:[#allocation8 + $0x68] sm:$0xff] %vm91_vm0, %v557_v13  ;;  %v187_v33 = vadd.f32 %v186_v49, %v185_v18  ;;  %v322_v57 = vsel %vm91_vm0, %v231_v50, 0.0 }
  0x86   :  { %594 = vst.msk [vmem:[#allocation8 + $0x70] sm:$0xff] %vm91_vm0, %v558_v19  ;;  %595 = vst.msk [vmem:[#allocation8 + $0x78] sm:$0xff] %vm91_vm0, %v559_v16  ;;  %v324_v38 = vsel %vm91_vm0, %v232_v26, 0.0  ;;  %v326_v59 = vsel %vm91_vm0, %v233_v27, 0.0  ;;  %v323_v17 = vadd.f32 %v322_v57, %v321_v1  ;;  %v328_v43 = vsel %vm91_vm0, %v234_v55, 0.0 }
  0x87   :  { %596 = vst.msk [vmem:[#allocation8 + $0x80] sm:$0xff] %vm91_vm0, %v560_v51  ;;  %597 = vst.msk [vmem:[#allocation8 + $0x88] sm:$0xff] %vm91_vm0, %v561_v30  ;;  %v319_v40 = vrot.slane %v318_v31, 1  ;;  %v330_v22 = vsel %vm91_vm0, %v235_v60, 0.0  ;;  %v188_v52 = vrot.slane %v187_v33, 4  ;;  %v369_v49 = vmul.f32 %v1105_v44, %v1047_v11 }
  0x88   :  { %v325_v26 = vadd.f32 %v324_v38, %v323_v17  ;;  %v373_v27 = vand.u32 2147483648, %v1047_v11  ;;  %v376_v4 = vmul.f32 %v1127_v41, %v1075_v53  ;;  %vm379_vm6 = vcmp.eq.f32.partialorder %v1075_v53, 0.0 }
  0x89   :  { %v320_v50 = vadd.f32 %v319_v40, %v318_v31  ;;  %v189_v28 = vadd.f32 %v188_v52, %v187_v33  ;;  %v371_v34 = vsel %vm370_vm2, %v1047_v11, %v369_v49  ;;  %v380_v56 = vand.u32 2147483648, %v1075_v53 }
  0x8a   :  { %v327_v6 = vadd.f32 %v326_v59, %v325_v26  ;;  %v374_v44 = vsel %vm372_vm3, %v373_v27, %v371_v34  ;;  %v378_v8 = vsel %vm377_vm5, %v1075_v53, %v376_v4  ;;  %v383_v41 = vmul.f32 %v1179_v15, %v1132_v25 }
  0x8b   :  { %v342_v61 = vmul.f32 0.020833334, %v320_v50  ;;  %v190_v62 = vrot.slane %v189_v28, 2  ;;  %v617_v54 = vsel %vm616_vm1, %v1008_v0, %v374_v44  ;;  %vm384_vm7 = vcmp.eq.f32.partialorder %v1132_v25, inf }
  0x8c   :  { %v329_v55 = vadd.f32 %v328_v43, %v327_v6  ;;  %624 = vst.msk [vmem:[#allocation9] sm:$0x3] %vm623_vm4, %v617_v54  ;;  %v381_v9 = vsel %vm379_vm6, %v380_v56, %v378_v8  ;;  %vm386_vm8 = vcmp.eq.f32.partialorder %v1132_v25, 0.0  ;;  %v385_v19 = vsel %vm384_vm7, %v1132_v25, %v383_v41 }
  0x8d   :  { %v680_v18 = vpop.eup %679  ;;  %v354_v11 = vsub.f32 %v342_v61, %v348_v20  ;;  %v191_v1 = vadd.f32 %v190_v62, %v189_v28  ;;  %v618_v53 = vsel %vm616_vm1, %v1031_v42, %v381_v9  ;;  %v387_v30 = vand.u32 2147483648, %v1132_v25 }
  0x8e   :  { %v421_v60 = vmul.f32 %v680_v18, %v1095_v29  ;;  %v331_v13 = vadd.f32 %v330_v22, %v329_v55  ;;  %625 = vst.msk [vmem:[#allocation9 + $0x2] sm:$0x3] %vm623_vm4, %v618_v53  ;;  %v390_v33 = vmul.f32 %v680_v18, %v1212_v63  ;;  %vm391_vm9 = vcmp.eq.f32.partialorder %v1212_v63, inf  ;;  %v1379_v53 = vld [vmem:[#allocation15_spill] sm:$0xff] }
  0x8f   :  { %v360_v0 = vmax.f32 %v354_v11, 0.0  ;;  %v192_v15 = vrot.slane %v191_v1, 1  ;;  %v388_v50 = vsel %vm386_vm8, %v387_v30, %v385_v19  ;;  %vm393_vm10 = vcmp.eq.f32.partialorder %v1212_v63, 0.0 }
  0x90   :  { %v427_v16 = vmul.f32 %v421_v60, %v1137_v2  ;;  %v457_v51 = vrot.slane %v421_v60, %v889_v5  ;;  %v332_v20 = vrot.slane %v331_v13, 4 }
  0x91   :  { %v366_v31 = vadd.f32 1e-05, %v360_v0  ;;  %v193_v52 = vadd.f32 %v192_v15, %v191_v1  ;;  %v1381_v15 = vld [vmem:[#allocation17_spill] sm:$0xff] }
  0x92   :  { %v433_v57 = vsub.f32 %v1116_v10, %v427_v16  ;;  %v490_v42 = vmul.f32 %v457_v51, %v1011_v14  ;;  %v491_v38 = vmul.f32 %v457_v51, %v1014_v21  ;;  %v492_v59 = vmul.f32 %v457_v51, %v1016_v23  ;;  %v1380_v16 = vld [vmem:[#allocation16_spill] sm:$0xff] }
  0x93   :  { %v493_v40 = vmul.f32 %v457_v51, %v1021_v35  ;;  %v494_v17 = vmul.f32 %v457_v51, %v1023_v36  ;;  %v495_v43 = vmul.f32 %v457_v51, %v1033_v45  ;;  %681 = vrsqrt.f32 %v366_v31 }
  0x94   :  { %v529_v22 = vrot.slane %v433_v57, %v889_v5  ;;  %v333_v49 = vadd.f32 %v332_v20, %v331_v13  ;;  %v619_v14 = vsel %vm616_vm1, %v1059_v32, %v388_v50  ;;  %v392_v21 = vsel %vm391_vm9, %v1212_v63, %v390_v33 }
  0x95   :  { %v394_v23 = vand.u32 2147483648, %v1212_v63  ;;  %626 = vst.msk [vmem:[#allocation9 + $0x4] sm:$0x3] %vm623_vm4, %v619_v14  ;;  %v1287_v25 = vmul.f32 0.020833334, %v193_v52  ;;  %vm398_vm11 = vcmp.eq.f32.partialorder %v366_v31, inf }
  0x96   :  { %v562_v35 = vadd.f32 %v529_v22, %v490_v42  ;;  %v563_v36 = vadd.f32 %v529_v22, %v491_v38  ;;  %v564_v45 = vadd.f32 %v529_v22, %v492_v59  ;;  %v565_v26 = vadd.f32 %v529_v22, %v493_v40 }
  0x97   :  { %v566_v27 = vadd.f32 %v529_v22, %v494_v17  ;;  %v567_v28 = vadd.f32 %v529_v22, %v495_v43  ;;  %v334_v34 = vrot.slane %v333_v49, 2  ;;  %v395_v32 = vsel %vm393_vm10, %v394_v23, %v392_v21 }
  0x98   :  { %598 = vst.msk [vmem:[#allocation8 + $0x90] sm:$0xff] %vm91_vm0, %v562_v35  ;;  %599 = vst.msk [vmem:[#allocation8 + $0x98] sm:$0xff] %vm91_vm0, %v563_v36  ;;  %v620_v4 = vsel %vm616_vm1, %v1137_v2, %v395_v32  ;;  %v349_v62 = vmul.f32 %v1287_v25, %v1287_v25  ;;  %v401_v54 = vand.u32 2147483648, %v366_v31  ;;  %vm400_vm12 = vcmp.eq.f32.partialorder %v366_v31, 0.0 }
  0x99   :  { %600 = vst.msk [vmem:[#allocation8 + $0xa0] sm:$0xff] %vm91_vm0, %v564_v45  ;;  %601 = vst.msk [vmem:[#allocation8 + $0xa8] sm:$0xff] %vm91_vm0, %v565_v26  ;;  %v335_v63 = vadd.f32 %v334_v34, %v333_v49 }
  0x9a   :  { %602 = vst.msk [vmem:[#allocation8 + $0xb0] sm:$0xff] %vm91_vm0, %v566_v27  ;;  %603 = vst.msk [vmem:[#allocation8 + $0xb8] sm:$0xff] %vm91_vm0, %v567_v28 }
  0x9b   :  { %627 = vst.msk [vmem:[#allocation9 + $0x6] sm:$0x3] %vm623_vm4, %v620_v4  ;;  %v336_v61 = vrot.slane %v335_v63, 1 }
  0x9d   :  { %v682_v6 = vpop.eup %681  ;;  %v337_v44 = vadd.f32 %v336_v61, %v335_v63 }
  0x9e   :  { %v422_v8 = vmul.f32 %v682_v6, %v1095_v29  ;;  %v397_v56 = vmul.f32 %v682_v6, %v366_v31 }
  0x9f   :  { %v343_v18 = vmul.f32 0.020833334, %v337_v44 }
  0xa0   :  { %v428_v11 = vmul.f32 %v422_v8, %v1215_v12  ;;  %v461_v55 = vrot.slane %v422_v8, %v889_v5  ;;  %v399_v2 = vsel %vm398_vm11, %v366_v31, %v397_v56 }
  0xa1   :  { %v355_v41 = vsub.f32 %v343_v18, %v349_v62  ;;  %v402_v60 = vsel %vm400_vm12, %v401_v54, %v399_v2 }
  0xa2   :  { %v434_v1 = vsub.f32 %v1116_v10, %v428_v11  ;;  %v496_v9 = vmul.f32 %v461_v55, %v1062_v39  ;;  %v497_v0 = vmul.f32 %v461_v55, %v1066_v46  ;;  %v498_v13 = vmul.f32 %v461_v55, %v1068_v47 }
  0xa3   :  { %v499_v19 = vmul.f32 %v461_v55, %v1379_v53  ;;  %v500_v51 = vmul.f32 %v461_v55, %v1380_v16  ;;  %v501_v30 = vmul.f32 %v461_v55, %v1381_v15  ;;  %v361_v20 = vmax.f32 %v355_v41, 0.0 }
  0xa4   :  { %v533_v33 = vrot.slane %v434_v1, %v889_v5  ;;  %v621_v31 = vsel %vm616_vm1, %v1215_v12, %v402_v60 }
  0xa5   :  { %v367_v57 = vadd.f32 1e-05, %v361_v20  ;;  %628 = vst.msk [vmem:[#allocation9 + $0x8] sm:$0x3] %vm623_vm4, %v621_v31 }
  0xa6   :  { %v568_v39 = vadd.f32 %v533_v33, %v496_v9  ;;  %v569_v42 = vadd.f32 %v533_v33, %v497_v0  ;;  %v570_v46 = vadd.f32 %v533_v33, %v498_v13  ;;  %v571_v38 = vadd.f32 %v533_v33, %v499_v19 }
  0xa7   :  { %v572_v47 = vadd.f32 %v533_v33, %v500_v51  ;;  %v573_v59 = vadd.f32 %v533_v33, %v501_v30  ;;  %683 = vrsqrt.f32 %v367_v57  ;;  %vm405_vm13 = vcmp.eq.f32.partialorder %v367_v57, inf }
  0xa8   :  { %604 = vst.msk [vmem:[#allocation8 + $0xc0] sm:$0xff] %vm91_vm0, %v568_v39  ;;  %605 = vst.msk [vmem:[#allocation8 + $0xc8] sm:$0xff] %vm91_vm0, %v569_v42  ;;  %v408_v40 = vand.u32 2147483648, %v367_v57  ;;  %vm407_vm14 = vcmp.eq.f32.partialorder %v367_v57, 0.0 }
  0xa9   :  { %606 = vst.msk [vmem:[#allocation8 + $0xd0] sm:$0xff] %vm91_vm0, %v570_v46  ;;  %607 = vst.msk [vmem:[#allocation8 + $0xd8] sm:$0xff] %vm91_vm0, %v571_v38 }
  0xaa   :  { %608 = vst.msk [vmem:[#allocation8 + $0xe0] sm:$0xff] %vm91_vm0, %v572_v47  ;;  %609 = vst.msk [vmem:[#allocation8 + $0xe8] sm:$0xff] %vm91_vm0, %v573_v59 }
  0xb1   :  { %v684_v12 = vpop.eup %683 }
  0xb2   :  { %v423_v17 = vmul.f32 %v684_v12, %v1095_v29  ;;  %v404_v43 = vmul.f32 %v684_v12, %v367_v57 }
  0xb4   :  { %v429_v22 = vmul.f32 %v423_v17, %v1287_v25  ;;  %v465_v52 = vrot.slane %v423_v17, %v889_v5  ;;  %v406_v49 = vsel %vm405_vm13, %v367_v57, %v404_v43 }
  0xb5   :  { %v409_v50 = vsel %vm407_vm14, %v408_v40, %v406_v49 }
  0xb6   :  { %v435_v14 = vsub.f32 %v1116_v10, %v429_v22  ;;  %v502_v21 = vmul.f32 %v465_v52, %v1155_v24  ;;  %v503_v29 = vmul.f32 %v465_v52, %v1157_v58  ;;  %v504_v23 = vmul.f32 %v465_v52, %v1159_v37 }
  0xb7   :  { %v505_v35 = vmul.f32 %v465_v52, %v1167_v48  ;;  %v506_v36 = vmul.f32 %v465_v52, %v1169_v3  ;;  %v507_v45 = vmul.f32 %v465_v52, %v1177_v7  ;;  %v622_v26 = vsel %vm616_vm1, %v1287_v25, %v409_v50 }
  0xb8   :  { %v537_v27 = vrot.slane %v435_v14, %v889_v5  ;;  %629 = vst.msk [vmem:[#allocation9 + $0xa] sm:$0x3] %vm623_vm4, %v622_v26 }
  0xb9   :  { %762 = shalt.err (!%p759_p0)
}
  0xba   :  { %s763_s7 = scalar_lea.hbm %s1372_s4, 192 }
  0xbb   :  { %p764_p1 = scmp.ne.s32.totalorder %s1372_s4, %s763_s7  ;;  %p767_p2 = scmp.lt.u32.totalorder %s763_s7, %s1372_s4 }
  0xbd   :  { %p769_p3 = pnand %p767_p2, %p764_p1 }
  0xbf   :  { %772 = shalt.err (!%p769_p3)
}
  0xc0   :  { %s810_s13 = smov 32   ;;  %s811_s14 = smov 2   ;;  %v574_v5 = vadd.f32 %v537_v27, %v502_v21  ;;  %v575_v10 = vadd.f32 %v537_v27, %v503_v29  ;;  %v576_v24 = vadd.f32 %v537_v27, %v504_v23  ;;  %v577_v58 = vadd.f32 %v537_v27, %v505_v35 }
  0xc1   :  { %653 = dma.vmem_to_hbm [thread:$0]  %s1317_s27, 192, %s1372_s4, [#allocation10], %s810_s13, %s810_s13, %s811_s14   ;;  %v578_v37 = vadd.f32 %v537_v27, %v506_v36  ;;  %v579_v48 = vadd.f32 %v537_v27, %v507_v45 }
  0xc2   :  { %610 = vst.msk [vmem:[#allocation8 + $0xf0] sm:$0xff] %vm91_vm0, %v574_v5  ;;  %611 = vst.msk [vmem:[#allocation8 + $0xf8] sm:$0xff] %vm91_vm0, %v575_v10  ;;  %s773_s4 = scalar_lea.vmem %s636_s29, 4608  ;;  %p778_p5 = scmp.lt.s32.totalorder %s636_s29, %s636_s29 }
  0xc3   :  { %612 = vst.msk [vmem:[#allocation8 + $0x100] sm:$0xff] %vm91_vm0, %v576_v24  ;;  %613 = vst.msk [vmem:[#allocation8 + $0x108] sm:$0xff] %vm91_vm0, %v577_v58  ;;  %p774_p4 = scmp.ne.s32.totalorder %s636_s29, %s773_s4  ;;  %p779_p6 = scmp.lt.s32.totalorder %s773_s4, %s773_s4 }
  0xc4   :  { %614 = vst.msk [vmem:[#allocation8 + $0x110] sm:$0xff] %vm91_vm0, %v578_v37  ;;  %615 = vst.msk [vmem:[#allocation8 + $0x118] sm:$0xff] %vm91_vm0, %v579_v48 }
  0xc5   :  { %p780_p7 = por %p779_p6, %p778_p5 }
  0xc7   :  { %p781_p8 = pnand %p780_p7, %p774_p4 }
  0xc9   :  { %784 = shalt.err (!%p781_p8)
}
  0xca   :  { %s785_s20 = scalar_lea.hbm %s1371_s3, 4608 }
  0xcb   :  { %p786_p9 = scmp.ne.s32.totalorder %s1371_s3, %s785_s20  ;;  %p789_p10 = scmp.lt.u32.totalorder %s785_s20, %s1371_s3 }
  0xcd   :  { %p791_p11 = pnand %p789_p10, %p786_p9 }
  0xcf   :  { %794 = shalt.err (!%p791_p11)
}
  0xd0   :  { %641 = dma.vmem_to_hbm [thread:$0]  %s636_s29, 4608, %s1371_s3, [#allocation4], %s805_s1, %s805_s1, %s806_s12  }
  0xd1   :  { %799 = dma.done.wait [#allocation4], 4608  }
  0xd2   :  { %800 = vsyncadd [#allocation4], 4294962688 }
  0xd3   :  { %801 = dma.done.wait [#allocation10], 192  }
  0xd4   :  { %802 = vsyncadd [#allocation10], 4294967104 }
  0xd5   :  { %660 = vsyncpa [#allocation3], 1 }
  0xd6   :  { %661 = vsyncpa [#allocation6], 1 }
  0xd7   :  { %662 = vsyncpa [#allocation4], 1 }
  0xd8   :  { %663 = vsyncpa [#allocation10], 1 }

</bundles_post_ra>
